<compile_context>
chip_gen: v5e
topology: v5e:2x2
jax: 0.10.0
libtpu: 0.0.40
codegen_flags: <defaults>
</compile_context>

<pallas_src>
import jax
import jax.numpy as jnp
from jax.experimental import pallas as pl
from jax.experimental.pallas import tpu as pltpu

_LANE = 128
_SUBLANE = 8


def _tanh_kernel(x_ref, o_ref):
    # Elementwise tanh on one (tm, tn) VMEM tile (EUP transcendental).
    o_ref[...] = jnp.tanh(x_ref[...])


def _tpu_vmem_bytes() -> int:
    """Physical VMEM capacity; conservative (v7x-sized) fallback on failure."""
    try:
        return int(pltpu.get_tpu_info().vmem_capacity_bytes)
    except Exception:
        return 64 * 1024 * 1024


def _choose_view(M: int, N: int) -> tuple[int, int]:
    """Lane-dense 2-D view of the same row-major element stream."""
    if N % _LANE == 0:
        return M, N
    total = M * N
    for L in (2048, 1024, 512, 256, 128):
        if total % L == 0:
            return total // L, L
    # Fall back: ragged last dim; Pallas masks the edge tiles (correct, just
    # slower stores).
    return M, N


def _choose_tiles(Mk: int, Nk: int, itemsize: int, vmem_bytes: int):
    """Pick (tm, tn, vmem_limit): full-width row slabs sized to VMEM budget."""
    if vmem_bytes >= 128 * 1024 * 1024:          # v5e / v6e (128 MiB VMEM)
        tile_budget = 8 * 1024 * 1024            # ~32 MiB with 2x(in+out) bufs
        vmem_limit = 64 * 1024 * 1024
    else:                                        # v7x (64 MiB VMEM) / unknown
        tile_budget = 4 * 1024 * 1024            # ~16 MiB with 2x(in+out) bufs
        vmem_limit = 32 * 1024 * 1024
    per_elem = 4 * itemsize                      # in + out, double-buffered

    tm_full = tile_budget // (per_elem * Nk)     # rows/tile at full width
    if Mk <= max(tm_full, 1):
        tm, tn = Mk, Nk                          # whole array in one tile
    elif tm_full >= _SUBLANE:
        tm = (tm_full // _SUBLANE) * _SUBLANE    # full-width row slabs
        tn = Nk
    else:
        # Rows too wide for a full-row slab: split N as well.
        tn = 2048 if Nk >= 2048 else max(_LANE, (Nk // _LANE) * _LANE)
        tn = min(tn, Nk)
        tm_cap = max(_SUBLANE,
                     (tile_budget // (per_elem * tn)) // _SUBLANE * _SUBLANE)
        tm = Mk if Mk <= tm_cap else tm_cap
    return tm, tn, vmem_limit


def _maybe_split_for_two_cores(Mk, Nk, tm, tn, itemsize, vmem_bytes):
    """On v7x-class chips ensure >=2 parallel grid steps for non-tiny inputs."""
    is_v7x_like = vmem_bytes < 128 * 1024 * 1024
    big_enough = Mk * Nk * itemsize >= 128 * 1024
    if not (is_v7x_like and big_enough):
        return tm, tn
    if pl.cdiv(Mk, tm) * pl.cdiv(Nk, tn) > 1:
        return tm, tn
    if Mk >= 2 * _SUBLANE:
        half = pl.cdiv(Mk, 2)
        tm = ((half + _SUBLANE - 1) // _SUBLANE) * _SUBLANE
    elif Nk >= 2 * _LANE:
        half = pl.cdiv(Nk, 2)
        tn = ((half + _LANE - 1) // _LANE) * _LANE
    return tm, tn


def pallas_tanh(a: jax.Array) -> jax.Array:
    """Equivalent of torch.tanh(a) for a 2-D float32 input."""
    assert a.ndim == 2, "module is annotated for rank-2 input"
    M, N = a.shape
    itemsize = a.dtype.itemsize

    # 1) Lane-dense view of the element stream (pure layout plumbing).
    Mk, Nk = _choose_view(M, N)
    x = a.reshape(Mk, Nk) if (Mk, Nk) != (M, N) else a

    # 2) Generation-gated tile sizing, full-width slabs preferred.
    vmem_bytes = _tpu_vmem_bytes()
    tm, tn, vmem_limit = _choose_tiles(Mk, Nk, itemsize, vmem_bytes)

    # 3) Keep both TensorCores busy on v7x-class chips.
    tm, tn = _maybe_split_for_two_cores(Mk, Nk, tm, tn, itemsize, vmem_bytes)

    grid = (pl.cdiv(Mk, tm), pl.cdiv(Nk, tn))

    out = pl.pallas_call(
        _tanh_kernel,
        out_shape=jax.ShapeDtypeStruct((Mk, Nk), a.dtype),
        grid_spec=pltpu.PrefetchScalarGridSpec(
            num_scalar_prefetch=0,
            grid=grid,
            in_specs=[pl.BlockSpec((tm, tn), lambda i, j: (i, j))],
            out_specs=pl.BlockSpec((tm, tn), lambda i, j: (i, j)),
        ),
        compiler_params=pltpu.CompilerParams(
            # Both axes independent -> shardable across v7x's 2 TensorCores;
            # a no-op on v5e/v6e.
            dimension_semantics=("parallel", "parallel"),
            # Explicit headroom; REQUIRED on v5e whose default scoped limit
            # (16 MiB) is below the double-buffered in+out footprint.
            vmem_limit_bytes=vmem_limit,
        ),
        cost_estimate=pl.CostEstimate(
            flops=0,
            transcendentals=M * N,
            bytes_accessed=2 * M * N * itemsize,
        ),
    )(x)

    return out.reshape(M, N) if (Mk, Nk) != (M, N) else out


if __name__ == "__main__":
    key = jax.random.PRNGKey(0)
    k1, k2, k3 = jax.random.split(key, 3)

    # Small shapes consistent with the ([-1, -1], float32) annotation.
    # (a) lane-aligned N -> direct path, single full-array tile.
    a1 = jax.random.normal(k1, (16, 256), dtype=jnp.float32)
    # (b) N not a multiple of 128 but total divisible by 128 -> lane-dense
    #     reshape path ((24*48)=1152 -> viewed as (9, 128)).
    a2 = jax.random.normal(k2, (24, 48), dtype=jnp.float32)
    # (c) awkward total -> ragged fallback path with masked edge tiles.
    a3 = jax.random.normal(k3, (13, 37), dtype=jnp.float32)

    ok = True
    for a in (a1, a2, a3):
        out = jax.block_until_ready(pallas_tanh(a))
        ref = jnp.tanh(a)
        ok &= out.shape == ref.shape and out.dtype == ref.dtype
        ok &= bool(jnp.allclose(out, ref, rtol=1e-5, atol=1e-6))

    assert ok
    print("KERNEL_OK")
</pallas_src>

<mosaic_0001>
module attributes {stable_mosaic.version = 11 : i64} {
  func.func @_tanh_kernel(%arg0: i32, %arg1: i32, %arg2: memref<16x256xf32, #tpu.memory_space<vmem>>, %arg3: memref<16x256xf32, #tpu.memory_space<vmem>>) attributes {dimension_semantics = [#tpu.dimension_semantics<parallel>, #tpu.dimension_semantics<parallel>], iteration_bounds = array<i64: 1, 1>, scalar_prefetch = 0 : i64, scratch_operands = 0 : i64, tpu.core_type = #tpu.core_type<tc>, window_params = [{transform_indices = @transform_0, window_bounds = array<i64: 16, 256>}, {transform_indices = @transform_1, window_bounds = array<i64: 16, 256>}]} {
    %c0 = arith.constant 0 : index
    %c0_0 = arith.constant 0 : index
    %0 = vector.load %arg2[%c0, %c0_0] : memref<16x256xf32, #tpu.memory_space<vmem>>, vector<16x256xf32>
    %1 = math.tanh %0 : vector<16x256xf32>
    %c0_1 = arith.constant 0 : index
    %c0_2 = arith.constant 0 : index
    %2 = vector.load %arg3[%c0_1, %c0_2] : memref<16x256xf32, #tpu.memory_space<vmem>>, vector<16x256xf32>
    tpu.vector_store %arg3[%c0_1, %c0_2], %1 {strides = array<i32>} : memref<16x256xf32, #tpu.memory_space<vmem>>, vector<16x256xf32>,
    return
  }
  func.func @transform_0(%arg0: i32, %arg1: i32) -> (i32, i32) {
    %c0_i32 = arith.constant 0 : i32
    return %arg0, %arg1 : i32, i32
  }
  func.func @transform_1(%arg0: i32, %arg1: i32) -> (i32, i32) {
    %c0_i32 = arith.constant 0 : i32
    return %arg0, %arg1 : i32, i32
  }
}

</mosaic_0001>

<bundles_post_ra>
// kernel: tpu_custom_call.1
= control target key start
LH: loop header
LB: loop body
LE: loop exit
PB: predicated region body
PF: predicated region fallthrough
CT: control target
= control target key end

     0   :  { %6 = vsyncpa [#allocation3], 0  ;;  %s140_s0 = inlined_call_operand.hbm [shape: f32[16,256], index: 0, kind: input, shape index: {}]   ;;  %s141_s1 = inlined_call_operand.hbm [shape: f32[16,256], index: 1, kind: output, shape index: {}]  }
   0x1   :  { %7 = vsyncpa [#allocation4], 0  ;;  %s12_s8 = sshll.u32 %s140_s0, 4  ;;  %s120_s9 = smov [#allocation2]   ;;  %s13_s8 = int_to_ptr.hbm [resolvable:$true] %s12_s8 }
   0x2   :  { %s14_s10 = sshll.u32 %s120_s9, 4  ;;  %s121_s11 = smov 256   ;;  %s15_s10 = int_to_ptr.vmem [resolvable:$true] %s14_s10 }
   0x3   :  { %s122_s12 = smov 16  }
   0x4   :  { %20 = dma.hbm_to_vmem [thread:$0]  %s13_s8, 512, %s15_s10, [#allocation3], %s121_s11, %s121_s11, %s122_s12  }
   0x5   :  { %116 = dma.done.wait [#allocation3], 512  }
   0x6   :  { %117 = vsyncadd [#allocation3], 4294966784  ;;  %v25_v0 = vld [vmem:[#allocation2] sm:$0xff]  ;;  %v26_v1 = vld [vmem:[#allocation2 + $0x8] sm:$0xff]  ;;  %s123_s13 = smov [#allocation5]   ;;  %s43_s16 = sshll.u32 %s141_s1, 4  ;;  %s44_s16 = int_to_ptr.hbm [resolvable:$true] %s43_s16 }
   0x7   :  { %v27_v2 = vld [vmem:[#allocation2 + $0x10] sm:$0xff]  ;;  %60 = vtanh.f32 %v25_v0  ;;  %v28_v3 = vld [vmem:[#allocation2 + $0x18] sm:$0xff]  ;;  %s41_s14 = sshll.u32 %s123_s13, 4  ;;  %s42_s14 = int_to_ptr.vmem [resolvable:$true] %s41_s14 }
   0x8   :  { %62 = vtanh.f32 %v26_v1 }
   0x9   :  { %64 = vtanh.f32 %v27_v2 }
   0xa   :  { %66 = vtanh.f32 %v28_v3 }
   0xd   :  { %v61_v4 = vpop.eup %60 }
   0xe   :  { %v63_v5 = vpop.eup %62  ;;  %33 = vst [vmem:[#allocation5] sm:$0xff] %v61_v4 }
   0xf   :  { %v65_v6 = vpop.eup %64  ;;  %34 = vst [vmem:[#allocation5 + $0x8] sm:$0xff] %v63_v5 }
  0x10   :  { %v67_v7 = vpop.eup %66  ;;  %35 = vst [vmem:[#allocation5 + $0x10] sm:$0xff] %v65_v6 }
  0x11   :  { %36 = vst [vmem:[#allocation5 + $0x18] sm:$0xff] %v67_v7 }
  0x12   :  { %49 = dma.vmem_to_hbm [thread:$0]  %s42_s14, 512, %s44_s16, [#allocation4], %s121_s11, %s121_s11, %s122_s12  }
  0x13   :  { %118 = dma.done.wait [#allocation4], 512  }
  0x14   :  { %119 = vsyncadd [#allocation4], 4294966784 }
  0x15   :  { %54 = vsyncpa [#allocation3], 1 }
  0x16   :  { %55 = vsyncpa [#allocation4], 1 }

</bundles_post_ra>
